<compile_context>
chip_gen: v6e
topology: v6e:2x2x1
jax: 0.10.0
libtpu: 0.0.40
codegen_flags: <defaults>
</compile_context>

<pallas_src>
import functools

import jax
import jax.numpy as jnp
from jax import lax
from jax.experimental import pallas as pl
from jax.experimental.pallas import tpu as pltpu

_EPS_IN = 1e-3   # InstanceNorm2d eps
_EPS_BN = 1e-5   # BatchNorm2d eps
_VMEM_LIMIT = 32 * 1024 * 1024  # safe on v5e/v6e/v7x


def _pick_tile(n):
    for t in (512, 256, 128):
        if n % t == 0:
            return t
    return n


def _stats_kernel(x_ref, gamma_ref, beta_ref, scale_ref, shift_ref,
                  sum_acc, sq_acc, *, n_total):
    """Accumulate per-(b,c) sum / sum-of-squares over N tiles; on the last tile
    fold InstanceNorm + BatchNorm (+affine) into one per-(b,c) affine (a, d)."""
    t = pl.program_id(0)

    @pl.when(t == 0)
    def _init():
        sum_acc[...] = jnp.zeros_like(sum_acc)
        sq_acc[...] = jnp.zeros_like(sq_acc)

    x = x_ref[...].astype(jnp.float32)                      # [B, C, tn]
    sum_acc[...] += jnp.sum(x, axis=2, keepdims=True)       # [B, C, 1]
    sq_acc[...] += jnp.sum(x * x, axis=2, keepdims=True)    # [B, C, 1]

    @pl.when(t == pl.num_programs(0) - 1)
    def _finalize():
        inv_n = 1.0 / float(n_total)
        mu = sum_acc[...] * inv_n                           # [B, C, 1]
        var = jnp.maximum(sq_acc[...] * inv_n - mu * mu, 0.0)
        rstd_in = lax.rsqrt(var + _EPS_IN)                  # InstanceNorm rstd
        # After IN: per-(b,c) mean over N of x_in^2 == var/(var+eps_in) and the
        # (B,N) mean of x_in is exactly 0, so BN batch stats are analytic.
        var_bn = jnp.mean(var * rstd_in * rstd_in, axis=0, keepdims=True)  # [1,C,1]
        bn_scale = gamma_ref[...] * lax.rsqrt(var_bn + _EPS_BN)            # [1,C,1]
        a = rstd_in * bn_scale                              # [B, C, 1]
        scale_ref[...] = a
        shift_ref[...] = beta_ref[...] - mu * a


def _compute_kernel(x_ref, xd_ref, w_ref, b_ref, scale_ref, shift_ref, out_ref):
    """One (batch, N-tile) step: affine-normalize + ReLU, 1x1 conv, softmax
    over output_points, then x_down @ S."""
    x = x_ref[...].astype(jnp.float32)                      # [C, tn]
    y = jnp.maximum(x * scale_ref[...] + shift_ref[...], 0.0)   # fused IN+BN+ReLU

    w = w_ref[...].astype(jnp.float32)                      # [M, C]
    embed = jnp.dot(w, y, preferred_element_type=jnp.float32) + b_ref[...]  # [M, tn]

    # softmax over the M (output_points) axis; divide on the EUP slot.
    emax = jnp.max(embed, axis=0, keepdims=True)
    e = jnp.exp(embed - emax)
    denom = jnp.sum(e, axis=0, keepdims=True)
    s = e * pl.reciprocal(denom, approx=True)               # [M, tn]

    xd = xd_ref[...].astype(jnp.float32)                    # [C, M]
    # TODO(synk): with very small M the MXU contraction is underfilled; a VPU
    # broadcast-FMA loop over M could replace this dot if the MXU slot binds.
    out = jnp.dot(xd, s, preferred_element_type=jnp.float32)    # [C, tn]
    out_ref[...] = out.astype(out_ref.dtype)


def diff_unpool_forward(x_up, x_down, conv_w, conv_b, bn_gamma, bn_beta):
    """x_up: [B, C, N, 1], x_down: [B, C, M, 1] -> out: [B, C, N, 1]."""
    B, C, N, _ = x_up.shape
    M = conv_w.shape[0]
    tn = _pick_tile(N)
    n_tiles = N // tn

    xu = x_up.reshape(B, C, N)                 # native dtype, no wrapper up-cast
    xd = x_down.reshape(B, C, M)
    w = conv_w.reshape(M, C).astype(jnp.float32)
    b = conv_b.reshape(M, 1).astype(jnp.float32)
    g = bn_gamma.reshape(1, C, 1).astype(jnp.float32)
    bt = bn_beta.reshape(1, C, 1).astype(jnp.float32)

    # --- Pass 1: normalization statistics -> per-(b,c) affine (scale, shift) ---
    scale, shift = pl.pallas_call(
        functools.partial(_stats_kernel, n_total=N),
        out_shape=(jax.ShapeDtypeStruct((B, C, 1), jnp.float32),
                   jax.ShapeDtypeStruct((B, C, 1), jnp.float32)),
        grid=(n_tiles,),
        in_specs=[
            pl.BlockSpec((B, C, tn), lambda t: (0, 0, t)),
            pl.BlockSpec((1, C, 1), lambda t: (0, 0, 0)),
            pl.BlockSpec((1, C, 1), lambda t: (0, 0, 0)),
        ],
        out_specs=(pl.BlockSpec((B, C, 1), lambda t: (0, 0, 0)),
                   pl.BlockSpec((B, C, 1), lambda t: (0, 0, 0))),
        scratch_shapes=[pltpu.VMEM((B, C, 1), jnp.float32),
                        pltpu.VMEM((B, C, 1), jnp.float32)],
        compiler_params=pltpu.CompilerParams(
            dimension_semantics=("arbitrary",),
            vmem_limit_bytes=_VMEM_LIMIT),
    )(xu, g, bt)

    # --- Pass 2: normalize + conv + softmax + matmul, tiled over (B, N) ---
    out = pl.pallas_call(
        _compute_kernel,
        out_shape=jax.ShapeDtypeStruct((B, C, N), x_up.dtype),
        grid=(B, n_tiles),
        in_specs=[
            pl.BlockSpec((None, C, tn), lambda bb, t: (bb, 0, t)),   # x_up tile
            pl.BlockSpec((None, C, M), lambda bb, t: (bb, 0, 0)),    # x_down (per-b, reused)
            pl.BlockSpec((M, C), lambda bb, t: (0, 0)),              # conv weight (grid-invariant)
            pl.BlockSpec((M, 1), lambda bb, t: (0, 0)),              # conv bias
            pl.BlockSpec((None, C, 1), lambda bb, t: (bb, 0, 0)),    # affine scale
            pl.BlockSpec((None, C, 1), lambda bb, t: (bb, 0, 0)),    # affine shift
        ],
        out_specs=pl.BlockSpec((None, C, tn), lambda bb, t: (bb, 0, t)),
        compiler_params=pltpu.CompilerParams(
            dimension_semantics=("parallel", "parallel"),
            vmem_limit_bytes=_VMEM_LIMIT),
    )(xu, xd, w, b, scale, shift)
    return out.reshape(B, C, N, 1)


def diff_unpool_reference(x_up, x_down, conv_w, conv_b, bn_gamma, bn_beta):
    """Pure-JAX two-pass reference (mirrors the PyTorch module) for validation."""
    B, C, N, _ = x_up.shape
    M = conv_w.shape[0]
    x = x_up.reshape(B, C, N).astype(jnp.float32)
    mu = jnp.mean(x, axis=2, keepdims=True)
    var = jnp.mean((x - mu) ** 2, axis=2, keepdims=True)
    x = (x - mu) / jnp.sqrt(var + _EPS_IN)
    mu = jnp.mean(x, axis=(0, 2), keepdims=True)
    var = jnp.mean((x - mu) ** 2, axis=(0, 2), keepdims=True)
    x = (x - mu) / jnp.sqrt(var + _EPS_BN) * bn_gamma.reshape(1, C, 1) \
        + bn_beta.reshape(1, C, 1)
    x = jnp.maximum(x, 0.0)
    embed = jnp.einsum('oc,bcn->bon', conv_w, x) + conv_b.reshape(1, M, 1)
    s = jax.nn.softmax(embed, axis=1)
    out = jnp.einsum('bcm,bmn->bcn', x_down.reshape(B, C, M).astype(jnp.float32), s)
    return out.reshape(B, C, N, 1)


if __name__ == "__main__":
    B, C, N = 2, 32, 1024         # batch, in_channel, num points (2 tiles of 512)
    M = 16                        # output_points

    key = jax.random.PRNGKey(0)
    k1, k2, k3, k4 = jax.random.split(key, 4)

    # inputs (NCHW with W=1, as in OANet)
    x_up = jax.random.normal(k1, (B, C, N, 1), dtype=jnp.float32)
    x_down = jax.random.normal(k2, (B, C, M, 1), dtype=jnp.float32)

    # parameters (fresh-module style init; conv params random)
    conv_w = jax.random.normal(k3, (M, C), dtype=jnp.float32) * 0.1   # 1x1 conv weight
    conv_b = jax.random.normal(k4, (M,), dtype=jnp.float32) * 0.1     # conv bias
    bn_gamma = jnp.ones((C,), dtype=jnp.float32)
    bn_beta = jnp.zeros((C,), dtype=jnp.float32)

    out = diff_unpool_forward(x_up, x_down, conv_w, conv_b, bn_gamma, bn_beta)
    out = jax.block_until_ready(out)

    ref = diff_unpool_reference(x_up, x_down, conv_w, conv_b, bn_gamma, bn_beta)
    assert out.shape == (B, C, N, 1)
    # slightly looser tolerance: fused E[x^2]-E[x]^2 stats + EUP approx reciprocal
    assert jnp.allclose(out, ref, rtol=2e-3, atol=2e-3), "mismatch vs reference"

    print("KERNEL_OK")
</pallas_src>

<mosaic_0001>
module attributes {stable_mosaic.version = 11 : i64} {
  func.func @_stats_kernel(%arg0: i32, %arg1: memref<2x32x512xf32, #tpu.memory_space<vmem>>, %arg2: memref<1x32x1xf32, #tpu.memory_space<vmem>>, %arg3: memref<1x32x1xf32, #tpu.memory_space<vmem>>, %arg4: memref<2x32x1xf32, #tpu.memory_space<vmem>>, %arg5: memref<2x32x1xf32, #tpu.memory_space<vmem>>, %arg6: memref<2x32x1xf32, #tpu.memory_space<vmem>>, %arg7: memref<2x32x1xf32, #tpu.memory_space<vmem>>) attributes {dimension_semantics = [#tpu.dimension_semantics<arbitrary>], iteration_bounds = array<i64: 2>, scalar_prefetch = 0 : i64, scratch_operands = 2 : i64, tpu.core_type = #tpu.core_type<tc>, window_params = [{transform_indices = @transform_0, window_bounds = array<i64: 2, 32, 512>}, {pipeline_mode = #tpu.pipeline_mode<synchronous>, transform_indices = @transform_1, window_bounds = array<i64: 1, 32, 1>}, {pipeline_mode = #tpu.pipeline_mode<synchronous>, transform_indices = @transform_2, window_bounds = array<i64: 1, 32, 1>}, {pipeline_mode = #tpu.pipeline_mode<synchronous>, transform_indices = @transform_3, window_bounds = array<i64: 2, 32, 1>}, {pipeline_mode = #tpu.pipeline_mode<synchronous>, transform_indices = @transform_4, window_bounds = array<i64: 2, 32, 1>}]} {
    %c0_i32 = arith.constant 0 : i32
    %0 = arith.cmpi eq, %arg0, %c0_i32 : i32
    %1 = arith.extui %0 : i1 to i32
    %c0_i32_0 = arith.constant 0 : i32
    %2 = arith.cmpi ne, %1, %c0_i32_0 : i32
    scf.if %2 {
      %cst_17 = arith.constant 0.000000e+00 : f32
      %18 = vector.broadcast %cst_17 : f32 to vector<2x32x1xf32>
      %c0_18 = arith.constant 0 : index
      %c0_19 = arith.constant 0 : index
      %c0_20 = arith.constant 0 : index
      %19 = vector.load %arg6[%c0_18, %c0_19, %c0_20] : memref<2x32x1xf32, #tpu.memory_space<vmem>>, vector<2x32x1xf32>
      tpu.vector_store %arg6[%c0_18, %c0_19, %c0_20], %18 {strides = array<i32>} : memref<2x32x1xf32, #tpu.memory_space<vmem>>, vector<2x32x1xf32>,
      %cst_21 = arith.constant 0.000000e+00 : f32
      %20 = vector.broadcast %cst_21 : f32 to vector<2x32x1xf32>
      %c0_22 = arith.constant 0 : index
      %c0_23 = arith.constant 0 : index
      %c0_24 = arith.constant 0 : index
      %21 = vector.load %arg7[%c0_22, %c0_23, %c0_24] : memref<2x32x1xf32, #tpu.memory_space<vmem>>, vector<2x32x1xf32>
      tpu.vector_store %arg7[%c0_22, %c0_23, %c0_24], %20 {strides = array<i32>} : memref<2x32x1xf32, #tpu.memory_space<vmem>>, vector<2x32x1xf32>,
    } else {
    }
    %c0 = arith.constant 0 : index
    %c0_1 = arith.constant 0 : index
    %c0_2 = arith.constant 0 : index
    %3 = vector.load %arg1[%c0, %c0_1, %c0_2] : memref<2x32x512xf32, #tpu.memory_space<vmem>>, vector<2x32x512xf32>
    %c0_3 = arith.constant 0 : index
    %c0_4 = arith.constant 0 : index
    %c0_5 = arith.constant 0 : index
    %4 = vector.load %arg6[%c0_3, %c0_4, %c0_5] : memref<2x32x1xf32, #tpu.memory_space<vmem>>, vector<2x32x1xf32>
    %cst = arith.constant dense<0.000000e+00> : vector<2x32xf32>
    %5 = vector.multi_reduction <add>, %3, %cst [2] : vector<2x32x512xf32> to vector<2x32xf32>
    %6 = vector.shape_cast %5 : vector<2x32xf32> to vector<2x32x1xf32>
    %7 = arith.addf %4, %6 : vector<2x32x1xf32>
    %c0_6 = arith.constant 0 : index
    %c0_7 = arith.constant 0 : index
    %c0_8 = arith.constant 0 : index
    %8 = vector.load %arg6[%c0_6, %c0_7, %c0_8] : memref<2x32x1xf32, #tpu.memory_space<vmem>>, vector<2x32x1xf32>
    tpu.vector_store %arg6[%c0_6, %c0_7, %c0_8], %7 {strides = array<i32>} : memref<2x32x1xf32, #tpu.memory_space<vmem>>, vector<2x32x1xf32>,
    %c0_9 = arith.constant 0 : index
    %c0_10 = arith.constant 0 : index
    %c0_11 = arith.constant 0 : index
    %9 = vector.load %arg7[%c0_9, %c0_10, %c0_11] : memref<2x32x1xf32, #tpu.memory_space<vmem>>, vector<2x32x1xf32>
    %10 = arith.mulf %3, %3 : vector<2x32x512xf32>
    %cst_12 = arith.constant dense<0.000000e+00> : vector<2x32xf32>
    %11 = vector.multi_reduction <add>, %10, %cst_12 [2] : vector<2x32x512xf32> to vector<2x32xf32>
    %12 = vector.shape_cast %11 : vector<2x32xf32> to vector<2x32x1xf32>
    %13 = arith.addf %9, %12 : vector<2x32x1xf32>
    %c0_13 = arith.constant 0 : index
    %c0_14 = arith.constant 0 : index
    %c0_15 = arith.constant 0 : index
    %14 = vector.load %arg7[%c0_13, %c0_14, %c0_15] : memref<2x32x1xf32, #tpu.memory_space<vmem>>, vector<2x32x1xf32>
    tpu.vector_store %arg7[%c0_13, %c0_14, %c0_15], %13 {strides = array<i32>} : memref<2x32x1xf32, #tpu.memory_space<vmem>>, vector<2x32x1xf32>,
    %c1_i32 = arith.constant 1 : i32
    %15 = arith.cmpi eq, %arg0, %c1_i32 : i32
    %16 = arith.extui %15 : i1 to i32
    %c0_i32_16 = arith.constant 0 : i32
    %17 = arith.cmpi ne, %16, %c0_i32_16 : i32
    scf.if %17 {
      %c0_17 = arith.constant 0 : index
      %c0_18 = arith.constant 0 : index
      %c0_19 = arith.constant 0 : index
      %18 = vector.load %arg6[%c0_17, %c0_18, %c0_19] : memref<2x32x1xf32, #tpu.memory_space<vmem>>, vector<2x32x1xf32>
      %cst_20 = arith.constant 9.765625E-4 : f32
      %19 = vector.broadcast %cst_20 : f32 to vector<2x32x1xf32>
      %20 = arith.mulf %18, %19 : vector<2x32x1xf32>
      %c0_21 = arith.constant 0 : index
      %c0_22 = arith.constant 0 : index
      %c0_23 = arith.constant 0 : index
      %21 = vector.load %arg7[%c0_21, %c0_22, %c0_23] : memref<2x32x1xf32, #tpu.memory_space<vmem>>, vector<2x32x1xf32>
      %cst_24 = arith.constant 9.765625E-4 : f32
      %22 = vector.broadcast %cst_24 : f32 to vector<2x32x1xf32>
      %23 = arith.mulf %21, %22 : vector<2x32x1xf32>
      %24 = arith.mulf %20, %20 : vector<2x32x1xf32>
      %25 = arith.subf %23, %24 : vector<2x32x1xf32>
      %cst_25 = arith.constant 0.000000e+00 : f32
      %26 = vector.broadcast %cst_25 : f32 to vector<2x32x1xf32>
      %27 = arith.maximumf %25, %26 : vector<2x32x1xf32>
      %cst_26 = arith.constant 1.000000e-03 : f32
      %28 = vector.broadcast %cst_26 : f32 to vector<2x32x1xf32>
      %29 = arith.addf %27, %28 : vector<2x32x1xf32>
      %30 = math.rsqrt %29 : vector<2x32x1xf32>
      %31 = arith.mulf %27, %30 : vector<2x32x1xf32>
      %32 = arith.mulf %31, %30 : vector<2x32x1xf32>
      %cst_27 = arith.constant dense<0.000000e+00> : vector<32x1xf32>
      %33 = vector.multi_reduction <add>, %32, %cst_27 [0] : vector<2x32x1xf32> to vector<32x1xf32>
      %34 = vector.shape_cast %33 : vector<32x1xf32> to vector<1x32x1xf32>
      %cst_28 = arith.constant 2.000000e+00 : f32
      %35 = vector.broadcast %cst_28 : f32 to vector<1x32x1xf32>
      %36 = arith.divf %34, %35 : vector<1x32x1xf32>
      %c0_29 = arith.constant 0 : index
      %c0_30 = arith.constant 0 : index
      %c0_31 = arith.constant 0 : index
      %37 = vector.load %arg2[%c0_29, %c0_30, %c0_31] : memref<1x32x1xf32, #tpu.memory_space<vmem>>, vector<1x32x1xf32>
      %cst_32 = arith.constant 9.99999974E-6 : f32
      %38 = vector.broadcast %cst_32 : f32 to vector<1x32x1xf32>
      %39 = arith.addf %36, %38 : vector<1x32x1xf32>
      %40 = math.rsqrt %39 : vector<1x32x1xf32>
      %41 = arith.mulf %37, %40 : vector<1x32x1xf32>
      %42 = vector.broadcast %41 : vector<1x32x1xf32> to vector<2x32x1xf32>
      %43 = arith.mulf %30, %42 : vector<2x32x1xf32>
      %c0_33 = arith.constant 0 : index
      %c0_34 = arith.constant 0 : index
      %c0_35 = arith.constant 0 : index
      %44 = vector.load %arg4[%c0_33, %c0_34, %c0_35] : memref<2x32x1xf32, #tpu.memory_space<vmem>>, vector<2x32x1xf32>
      tpu.vector_store %arg4[%c0_33, %c0_34, %c0_35], %43 {strides = array<i32>} : memref<2x32x1xf32, #tpu.memory_space<vmem>>, vector<2x32x1xf32>,
      %c0_36 = arith.constant 0 : index
      %c0_37 = arith.constant 0 : index
      %c0_38 = arith.constant 0 : index
      %45 = vector.load %arg3[%c0_36, %c0_37, %c0_38] : memref<1x32x1xf32, #tpu.memory_space<vmem>>, vector<1x32x1xf32>
      %46 = arith.mulf %20, %43 : vector<2x32x1xf32>
      %47 = vector.broadcast %45 : vector<1x32x1xf32> to vector<2x32x1xf32>
      %48 = arith.subf %47, %46 : vector<2x32x1xf32>
      %c0_39 = arith.constant 0 : index
      %c0_40 = arith.constant 0 : index
      %c0_41 = arith.constant 0 : index
      %49 = vector.load %arg5[%c0_39, %c0_40, %c0_41] : memref<2x32x1xf32, #tpu.memory_space<vmem>>, vector<2x32x1xf32>
      tpu.vector_store %arg5[%c0_39, %c0_40, %c0_41], %48 {strides = array<i32>} : memref<2x32x1xf32, #tpu.memory_space<vmem>>, vector<2x32x1xf32>,
    } else {
    }
    return
  }
  func.func @transform_0(%arg0: i32) -> (i32, i32, i32) {
    %c0_i32 = arith.constant 0 : i32
    %c0_i32_0 = arith.constant 0 : i32
    %c0_i32_1 = arith.constant 0 : i32
    return %c0_i32, %c0_i32_0, %arg0 : i32, i32, i32
  }
  func.func @transform_1(%arg0: i32) -> (i32, i32, i32) {
    %c0_i32 = arith.constant 0 : i32
    %c0_i32_0 = arith.constant 0 : i32
    %c0_i32_1 = arith.constant 0 : i32
    %c0_i32_2 = arith.constant 0 : i32
    return %c0_i32, %c0_i32_0, %c0_i32_1 : i32, i32, i32
  }
  func.func @transform_2(%arg0: i32) -> (i32, i32, i32) {
    %c0_i32 = arith.constant 0 : i32
    %c0_i32_0 = arith.constant 0 : i32
    %c0_i32_1 = arith.constant 0 : i32
    %c0_i32_2 = arith.constant 0 : i32
    return %c0_i32, %c0_i32_0, %c0_i32_1 : i32, i32, i32
  }
  func.func @transform_3(%arg0: i32) -> (i32, i32, i32) {
    %c0_i32 = arith.constant 0 : i32
    %c0_i32_0 = arith.constant 0 : i32
    %c0_i32_1 = arith.constant 0 : i32
    %c0_i32_2 = arith.constant 0 : i32
    return %c0_i32, %c0_i32_0, %c0_i32_1 : i32, i32, i32
  }
  func.func @transform_4(%arg0: i32) -> (i32, i32, i32) {
    %c0_i32 = arith.constant 0 : i32
    %c0_i32_0 = arith.constant 0 : i32
    %c0_i32_1 = arith.constant 0 : i32
    %c0_i32_2 = arith.constant 0 : i32
    return %c0_i32, %c0_i32_0, %c0_i32_1 : i32, i32, i32
  }
}

</mosaic_0001>

<bundles_post_ra>
// kernel: tpu_custom_call.1
= control target key start
LH: loop header
LB: loop body
LE: loop exit
PB: predicated region body
PF: predicated region fallthrough
CT: control target
= control target key end

     0   :  { %10 = vsyncpa [#allocation5], 0  ;;  %s1132_s0 = inlined_call_operand.hbm [shape: f32[2,32,1024], index: 0, kind: input, shape index: {}]   ;;  %s1133_s1 = inlined_call_operand.vmem [shape: f32[1,32,1], index: 1, kind: input, shape index: {}]   ;;  %s1134_s2 = inlined_call_operand.vmem [shape: f32[1,32,1], index: 2, kind: input, shape index: {}]   ;;  %s1135_s3 = inlined_call_operand.vmem [shape: f32[2,32,1], index: 3, kind: output, shape index: {0}]   ;;  %s1136_s4 = inlined_call_operand.vmem [shape: f32[2,32,1], index: 4, kind: output, shape index: {1}]  }
   0x1   :  { %12 = vsyncpa [#allocation5 + $0x1], 0  ;;  %s804_s15 = smov 0   ;;  %s806_s16 = smov 0  }
   0x2   :  { %s808_s17 = smov 0   ;;  %s810_s18 = smov 0  }
   0x3 LB: > { %s823_s19 = sadd.s32 4294967295, %s772_s18   ;;  %s826_s20 = sadd.s32 1, %s772_s18   ;;  %s772_s18 = sphi %s810_s18, %s1144_s18   ;;  %s768_s17 = sphi %s808_s17, %s1143_s17   ;;  %s764_s16 = sphi %s806_s16, %s1142_s16   ;;  %s760_s15 = sphi %s804_s15, %s1141_s15  }
   0x4   : > { %s22_s21 = ssub.s32 %s772_s18, %s826_s20  ;;  %s25_s22 = sadd.s32 1, %s768_s17 }
   0x5   : > { %p23_p0 = scmp.eq.s32.totalorder %s22_s21, 0  ;;  %p32_p1 = scmp.ne.s32.totalorder %s768_s17, %s764_s16 }
   0x6   : > { %p33_p2 = scmp.eq.s32.totalorder %s772_s18, 0  ;;  %p38_p3 = scmp.ne.s32.totalorder %s764_s16, %s760_s15 }
   0x7   : > { %s836_s23 = scalar_select %p23_p0, %s768_s17, %s25_s22  }
   0x8   : > { %p34_p4 = por %p33_p2, %p32_p1  ;;  %p39_p5 = scmp.eq.s32.totalorder %s823_s19, 0 }
   0x9   : > { %p649_p6 = scmp.lt.s32.totalorder %s772_s18, 2  ;;  %s152_s25 = sand.u32 1, %s768_s17  }
   0xa   : > { %p840_p7 = por %p39_p5, %p38_p3  ;;  %s633_s26 = sshll.u32 %s152_s25, 8 }
   0xb   : > { %s642_s27 = sshll.u32 %s772_s18, 9  ;;  %s156_s5 = scalar_lea.vmem [#allocation4], %s633_s26 }
   0xc   : > { %s1138_s24 = scalar_select %p840_p7, 1, 0 }
   0xd   : > { %s849_s30 = scalar_lea.hbm %s1132_s0, %s642_s27  ;;  %s163_s6 = sshll.u32 %s156_s5, 4  ;;  %s851_s6 = int_to_ptr.vmem [resolvable:$true] %s163_s6 }
   0xe   : > { %p853_p8 = pnand %p649_p6, %p34_p4  ;;  %s857_s8 = scalar_lea.sflag [#allocation5], %s152_s25 }
   0xf   : > { %s710_s9 = scalar_lea.hbm %s849_s30, 4096  ;;  %s715_s12 = scalar_lea.hbm %s1132_s0, 8192 }
  0x10   : > { %p711_p9 = scmp.ne.s32.totalorder %s849_s30, %s710_s9  ;;  %p712_p10 = pneg %p853_p8 }
  0x11   : > { %p716_p13 = scmp.lt.s32.totalorder %s849_s30, %s1132_s0  ;;  %p717_p0 = scmp.lt.s32.totalorder %s715_s12, %s710_s9 }
  0x12   : > { %p713_p11 = pnand %p712_p10, %p711_p9 }
  0x13   : > { %p718_p1 = por %p717_p0, %p716_p13 }
  0x14   : > { %p714_p12 = pneg %p713_p11 }
  0x16   : > { %p719_p2 = pnand %p718_p1, %p714_p12 }
  0x18   : > { %722 = shalt.err (!%p719_p2)
}
  0x19   : > { %s723_s15 = scalar_lea.vmem %s851_s6, 4096  ;;  %s774_s21 = smov [#allocation4]  }
  0x1a   : > { %p724_p3 = scmp.ne.s32.totalorder %s851_s6, %s723_s15  ;;  %s728_s22 = sshll.u32 %s774_s21, 4  ;;  %s729_s22 = int_to_ptr.vmem [resolvable:$false] %s728_s22 }
  0x1b   : > { %s730_s25 = scalar_lea.vmem %s729_s22, 8192  ;;  %p731_p6 = scmp.lt.s32.totalorder %s851_s6, %s729_s22 }
  0x1c   : > { %p726_p4 = pnand %p724_p3, %p712_p10  ;;  %p732_p9 = scmp.lt.s32.totalorder %s730_s25, %s723_s15 }
  0x1e   : > { %p727_p5 = pneg %p726_p4  ;;  %p733_p11 = por %p732_p9, %p731_p6 }
  0x20   : > { %p734_p7 = pnand %p733_p11, %p727_p5 }
  0x22   : > { %737 = shalt.err (!%p734_p7)
}
  0x23   : > { %s775_s26 = smov 1024   ;;  %s776_s27 = smov 512  }
  0x24   : > { %s777_s28 = smov 32   ;;  %p636_p10 = scmp.ge.s32.totalorder %s772_s18, 1 }
  0x25   : > { %648 = dma.hbm_to_vmem [thread:$0]  (!%p853_p8), %s849_s30, 4096, %s851_s6, %s857_s8, %s775_s26, %s776_s27, %s777_s28  }
  0x26   : > { %p171_p12 = scmp.lt.s32.totalorder %s772_s18, 3 }
  0x28   : > { %p172_p13 = pnand %p636_p10, %p171_p12 }
  0x29   : > { %s177_s29 = sand.u32 (!%p172_p13), 1, %s764_s16   ;;  %p1140_p7 = scmp.ne.s32.totalorder (!%p172_p13), %s1138_s24, 0 }
  0x2a   : > { %175 = sbr.rel (%p172_p13) target bundleno = 308 (0x134), region = 32  ;;  %s637_s5 = sshll.u32 (!%p172_p13), %s177_s29, 8 }
  0x2b   : > { %s178_s9 = scalar_lea.sflag (!%p172_p13), [#allocation5], %s177_s29  ;;  %s881_s10 = scalar_lea.vmem (!%p172_p13), [#allocation4], %s637_s5 }
  0x2f   : > { %755 = dma.done.wait (%p1140_p7), %s178_s9, 4096  }
  0x30   : > { %757 = vsyncadd (%p1140_p7), %s178_s9, 4294963200  ;;  %p638_p0 = scmp.ne.s32.totalorder %s823_s19, 0 }
  0x32   : > { %205 = sbr.rel (%p638_p0) target bundleno = 64 (0x40), region = 40 }
  0x37   : > { %vm206_vm0 = vcmask 7168   ;;  %v778_v0 = vmov 0.0  }
  0x38   : > { %207 = vst.msk [vmem:[#allocation2] sm:$0xff] %vm206_vm0, %v778_v0  ;;  %208 = vst.msk [vmem:[#allocation2 + $0x8] sm:$0xff] %vm206_vm0, %v778_v0 }
  0x39   : > { %209 = vst.msk [vmem:[#allocation2 + $0x10] sm:$0xff] %vm206_vm0, %v778_v0  ;;  %210 = vst.msk [vmem:[#allocation2 + $0x18] sm:$0xff] %vm206_vm0, %v778_v0 }
  0x3a   : > { %211 = vst.msk [vmem:[#allocation2 + $0x20] sm:$0xff] %vm206_vm0, %v778_v0  ;;  %212 = vst.msk [vmem:[#allocation2 + $0x28] sm:$0xff] %vm206_vm0, %v778_v0 }
  0x3b   : > { %213 = vst.msk [vmem:[#allocation2 + $0x30] sm:$0xff] %vm206_vm0, %v778_v0  ;;  %214 = vst.msk [vmem:[#allocation2 + $0x38] sm:$0xff] %vm206_vm0, %v778_v0 }
  0x3c   : > { %215 = vst.msk [vmem:[#allocation3] sm:$0xff] %vm206_vm0, %v778_v0  ;;  %216 = vst.msk [vmem:[#allocation3 + $0x8] sm:$0xff] %vm206_vm0, %v778_v0 }
  0x3d   : > { %217 = vst.msk [vmem:[#allocation3 + $0x10] sm:$0xff] %vm206_vm0, %v778_v0  ;;  %218 = vst.msk [vmem:[#allocation3 + $0x18] sm:$0xff] %vm206_vm0, %v778_v0 }
  0x3e   : > { %219 = vst.msk [vmem:[#allocation3 + $0x20] sm:$0xff] %vm206_vm0, %v778_v0  ;;  %220 = vst.msk [vmem:[#allocation3 + $0x28] sm:$0xff] %vm206_vm0, %v778_v0 }
  0x3f   : > { %221 = vst.msk [vmem:[#allocation3 + $0x30] sm:$0xff] %vm206_vm0, %v778_v0  ;;  %222 = vst.msk [vmem:[#allocation3 + $0x38] sm:$0xff] %vm206_vm0, %v778_v0 }
  0x40 PF: > { %v231_v1 = vld [vmem:[%s881_s10 + $0x40] sm:$0xff]  ;;  %v232_v2 = vld [vmem:[%s881_s10 + $0x48] sm:$0xff]  ;;  %v907_v3 = vld [vmem:[%s881_s10 + $0x50] sm:$0xff]  ;;  %vm311_vm1 = vcmask 7168   ;;  %p639_p8 = scmp.ne.s32.totalorder %s823_s19, 1 }
  0x41   : > { %v273_v4 = vadd.f32 %v232_v2, %v231_v1  ;;  %v223_v5 = vld [vmem:[%s881_s10] sm:$0xff]  ;;  %v224_v6 = vld [vmem:[%s881_s10 + $0x8] sm:$0xff]  ;;  %v912_v7 = vld [vmem:[%s881_s10 + $0x58] sm:$0xff]  ;;  %v336_v35 = vmul.f32 %v231_v1, %v231_v1  ;;  %v337_v36 = vmul.f32 %v232_v2, %v232_v2  ;;  %v338_v2 = vmul.f32 %v907_v3, %v907_v3 }
  0x42   : > { %v225_v8 = vld [vmem:[%s881_s10 + $0x10] sm:$0xff]  ;;  %v263_v9 = vadd.f32 %v224_v6, %v223_v5  ;;  %v235_v10 = vld [vmem:[%s881_s10 + $0x60] sm:$0xff]  ;;  %v226_v12 = vld [vmem:[%s881_s10 + $0x18] sm:$0xff]  ;;  %v328_v16 = vmul.f32 %v223_v5, %v223_v5  ;;  %v329_v22 = vmul.f32 %v224_v6, %v224_v6 }
  0x43   : > { %v274_v11 = vadd.f32 %v273_v4, %v907_v3  ;;  %v236_v13 = vld [vmem:[%s881_s10 + $0x68] sm:$0xff]  ;;  %v237_v14 = vld [vmem:[%s881_s10 + $0x70] sm:$0xff]  ;;  %v227_v18 = vld [vmem:[%s881_s10 + $0x20] sm:$0xff]  ;;  %v330_v37 = vmul.f32 %v225_v8, %v225_v8  ;;  %v340_v48 = vmul.f32 %v235_v10, %v235_v10  ;;  %v331_v4 = vmul.f32 %v226_v12, %v226_v12 }
  0x44   : > { %v264_v15 = vadd.f32 %v263_v9, %v225_v8  ;;  %v278_v17 = vadd.f32 %v236_v13, %v235_v10  ;;  %v228_v19 = vld [vmem:[%s881_s10 + $0x28] sm:$0xff]  ;;  %v229_v20 = vld [vmem:[%s881_s10 + $0x30] sm:$0xff]  ;;  %v925_v23 = vld [vmem:[%s881_s10 + $0x78] sm:$0xff]  ;;  %v332_v27 = vmul.f32 %v227_v18, %v227_v18  ;;  %v360_v54 = vadd.f32 %v329_v22, %v328_v16 }
  0x45   : > { %v275_v21 = vadd.f32 %v274_v11, %v912_v7  ;;  %v268_v24 = vadd.f32 %v228_v19, %v227_v18  ;;  %v243_v25 = vld [vmem:[%s881_s10 + $0xa0] sm:$0xff]  ;;  %v244_v26 = vld [vmem:[%s881_s10 + $0xa8] sm:$0xff]  ;;  %v230_v30 = vld [vmem:[%s881_s10 + $0x38] sm:$0xff]  ;;  %v333_v34 = vmul.f32 %v228_v19, %v228_v19  ;;  %v341_v55 = vmul.f32 %v236_v13, %v236_v13 }
  0x46   : > { %v265_v28 = vadd.f32 %v264_v15, %v226_v12  ;;  %v279_v29 = vadd.f32 %v278_v17, %v237_v14  ;;  %v245_v31 = vld [vmem:[%s881_s10 + $0xb0] sm:$0xff]  ;;  %v288_v32 = vadd.f32 %v244_v26, %v243_v25  ;;  %v239_v33 = vld [vmem:[%s881_s10 + $0x80] sm:$0xff]  ;;  %v933_v39 = vld [vmem:[%s881_s10 + $0xb8] sm:$0xff]  ;;  %v334_v59 = vmul.f32 %v229_v20, %v229_v20 }
  0x47   : > { %276 = vadd.xlane.f32.xlu1 %v275_v21  ;;  %v269_v38 = vadd.f32 %v268_v24, %v229_v20  ;;  %v240_v40 = vld [vmem:[%s881_s10 + $0x88] sm:$0xff]  ;;  %v241_v41 = vld [vmem:[%s881_s10 + $0x90] sm:$0xff]  ;;  %v251_v45 = vld [vmem:[%s881_s10 + $0xe0] sm:$0xff]  ;;  %v365_v60 = vadd.f32 %v333_v34, %v332_v27  ;;  %v335_v6 = vmul.f32 %v230_v30, %v230_v30  ;;  %v361_v8 = vadd.f32 %v360_v54, %v330_v37 }
  0x48   : > { %266 = vadd.xlane.f32.xlu0 %v265_v28  ;;  %v280_v42 = vadd.f32 %v279_v29, %v925_v23  ;;  %v289_v43 = vadd.f32 %v288_v32, %v245_v31  ;;  %v283_v44 = vadd.f32 %v240_v40, %v239_v33  ;;  %v252_v46 = vld [vmem:[%s881_s10 + $0xe8] sm:$0xff]  ;;  %v253_v47 = vld [vmem:[%s881_s10 + $0xf0] sm:$0xff]  ;;  %v242_v50 = vld [vmem:[%s881_s10 + $0x98] sm:$0xff]  ;;  %v342_v10 = vmul.f32 %v237_v14, %v237_v14 }
  0x49   : > { %v270_v49 = vadd.f32 %v269_v38, %v230_v30  ;;  %v298_v51 = vadd.f32 %v252_v46, %v251_v45  ;;  %v247_v52 = vld [vmem:[%s881_s10 + $0xc0] sm:$0xff]  ;;  %v248_v53 = vld [vmem:[%s881_s10 + $0xc8] sm:$0xff]  ;;  %v249_v57 = vld [vmem:[%s881_s10 + $0xd0] sm:$0xff]  ;;  %v366_v9 = vadd.f32 %v365_v60, %v334_v59  ;;  %v375_v11 = vadd.f32 %v341_v55, %v340_v48 }
  0x4a   : > { %v284_v56 = vadd.f32 %v283_v44, %v241_v41  ;;  %v293_v58 = vadd.f32 %v248_v53, %v247_v52  ;;  %v290_v61 = vadd.f32 %v289_v43, %v933_v39  ;;  %v254_v0 = vld [vmem:[%s881_s10 + $0xf8] sm:$0xff]  ;;  %v370_v13 = vadd.f32 %v337_v36, %v336_v35 }
  0x4b   : > { %281 = vadd.xlane.f32.xlu1 %v280_v42  ;;  %v299_v62 = vadd.f32 %v298_v51, %v253_v47  ;;  %v250_v5 = vld [vmem:[%s881_s10 + $0xd8] sm:$0xff]  ;;  %v348_v16 = vmul.f32 %v243_v25, %v243_v25  ;;  %v349_v17 = vmul.f32 %v244_v26, %v244_v26  ;;  %v344_v19 = vmul.f32 %v239_v33, %v239_v33  ;;  %v255_v51 = vld [vmem:[#allocation2] sm:$0xff] }
  0x4c   : > { %271 = vadd.xlane.f32.xlu0 %v270_v49  ;;  %v285_v63 = vadd.f32 %v284_v56, %v242_v50  ;;  %v294_v1 = vadd.f32 %v293_v58, %v249_v57  ;;  %v345_v20 = vmul.f32 %v240_v40, %v240_v40  ;;  %v339_v21 = vmul.f32 %v912_v7, %v912_v7  ;;  %v258_v55 = vld [vmem:[#allocation2 + $0x18] sm:$0xff]  ;;  %v256_v56 = vld [vmem:[#allocation2 + $0x8] sm:$0xff] }
  0x4d   : > { %v300_v15 = vadd.f32 %v299_v62, %v254_v0  ;;  %v362_v3 = vadd.f32 %v361_v8, %v331_v4  ;;  %v367_v12 = vadd.f32 %v366_v9, %v335_v6  ;;  %v343_v22 = vmul.f32 %v925_v23, %v925_v23  ;;  %v259_v62 = vld [vmem:[#allocation2 + $0x20] sm:$0xff]  ;;  %v262_v4 = vld [vmem:[#allocation2 + $0x38] sm:$0xff] }
  0x4e   : > { %v295_v18 = vadd.f32 %v294_v1, %v250_v5  ;;  %v376_v24 = vadd.f32 %v375_v11, %v342_v10  ;;  %v371_v14 = vadd.f32 %v370_v13, %v338_v2  ;;  %v350_v27 = vmul.f32 %v245_v31, %v245_v31  ;;  %v321_v11 = vld [vmem:[#allocation3 + $0x8] sm:$0xff]  ;;  %v320_v13 = vld [vmem:[#allocation3] sm:$0xff] }
  0x4f   : > { %291 = vadd.xlane.f32.xlu1 %v290_v61  ;;  %v385_v28 = vadd.f32 %v349_v17, %v348_v16  ;;  %v356_v29 = vmul.f32 %v251_v45, %v251_v45  ;;  %v357_v25 = vmul.f32 %v252_v46, %v252_v46  ;;  %v346_v26 = vmul.f32 %v241_v41, %v241_v41  ;;  %v260_v61 = vld [vmem:[#allocation2 + $0x28] sm:$0xff] }
  0x50   : > { %286 = vadd.xlane.f32.xlu0 %v285_v63  ;;  %v380_v30 = vadd.f32 %v345_v20, %v344_v19  ;;  %v352_v32 = vmul.f32 %v247_v52, %v247_v52  ;;  %v353_v33 = vmul.f32 %v248_v53, %v248_v53  ;;  %v377_v34 = vadd.f32 %v376_v24, %v343_v22  ;;  %v323_v19 = vld [vmem:[#allocation3 + $0x18] sm:$0xff]  ;;  %v322_v20 = vld [vmem:[#allocation3 + $0x10] sm:$0xff]  ;;  %v325_v24 = vld [vmem:[#allocation3 + $0x28] sm:$0xff] }
  0x51   : > { %v351_v7 = vmul.f32 %v933_v39, %v933_v39  ;;  %v372_v35 = vadd.f32 %v371_v14, %v339_v21  ;;  %v386_v36 = vadd.f32 %v385_v28, %v350_v27  ;;  %v358_v23 = vmul.f32 %v253_v47, %v253_v47  ;;  %v257_v47 = vld [vmem:[#allocation2 + $0x10] sm:$0xff]  ;;  %v324_v14 = vld [vmem:[#allocation3 + $0x20] sm:$0xff] }
  0x52   : > { %v395_v37 = vadd.f32 %v357_v25, %v356_v29  ;;  %v347_v38 = vmul.f32 %v242_v50, %v242_v50  ;;  %v381_v31 = vadd.f32 %v380_v30, %v346_v26  ;;  %v354_v40 = vmul.f32 %v249_v57, %v249_v57  ;;  %v327_v26 = vld [vmem:[#allocation3 + $0x38] sm:$0xff]  ;;  %v326_v30 = vld [vmem:[#allocation3 + $0x30] sm:$0xff] }
  0x53   : > { %301 = vadd.xlane.f32.xlu1 %v300_v15  ;;  %v390_v42 = vadd.f32 %v353_v33, %v352_v32  ;;  %v387_v43 = vadd.f32 %v386_v36, %v351_v7  ;;  %v359_v41 = vmul.f32 %v254_v0, %v254_v0  ;;  %v355_v46 = vmul.f32 %v250_v5, %v250_v5  ;;  %v261_v5 = vld [vmem:[#allocation2 + $0x30] sm:$0xff] }
  0x54   : > { %296 = vadd.xlane.f32.xlu0 %v295_v18  ;;  %v396_v44 = vadd.f32 %v395_v37, %v358_v23  ;;  %v382_v45 = vadd.f32 %v381_v31, %v347_v38 }
  0x55   : > { %v391_v48 = vadd.f32 %v390_v42, %v354_v40 }
  0x56   : > { %v397_v39 = vadd.f32 %v396_v44, %v359_v41 }
  0x57   : > { %368 = vadd.xlane.f32.xlu1 %v367_v12  ;;  %v392_v49 = vadd.f32 %v391_v48, %v355_v46 }
  0x58   : > { %363 = vadd.xlane.f32.xlu0 %v362_v3 }
  0x5b   : > { %378 = vadd.xlane.f32.xlu1 %v377_v34 }
  0x5c   : > { %373 = vadd.xlane.f32.xlu0 %v372_v35 }
  0x5f   : > { %388 = vadd.xlane.f32.xlu1 %v387_v43 }
  0x60   : > { %383 = vadd.xlane.f32.xlu0 %v382_v45 }
  0x63   : > { %398 = vadd.xlane.f32.xlu1 %v397_v39 }
  0x64   : > { %393 = vadd.xlane.f32.xlu0 %v392_v49 }
  0xd0   : > { %v277_v50 = vpop.xlane.xlu1 %276 }
  0xd1   : > { %v305_v52 = vadd.f32 %v277_v50, %v257_v47  ;;  %v267_v53 = vpop.xlane.xlu0 %266 }
  0xd2   : > { %v303_v54 = vadd.f32 %v267_v53, %v255_v51 }
  0xd3   : > { %314 = vst.msk [vmem:[#allocation2 + $0x10] sm:$0xff] %vm311_vm1, %v305_v52 }
  0xd4   : > { %312 = vst.msk [vmem:[#allocation2] sm:$0xff] %vm311_vm1, %v303_v54  ;;  %v282_v57 = vpop.xlane.xlu1 %281 }
  0xd5   : > { %v306_v58 = vadd.f32 %v282_v57, %v258_v55  ;;  %v272_v59 = vpop.xlane.xlu0 %271 }
  0xd6   : > { %v304_v60 = vadd.f32 %v272_v59, %v256_v56 }
  0xd7   : > { %315 = vst.msk [vmem:[#allocation2 + $0x18] sm:$0xff] %vm311_vm1, %v306_v58 }
  0xd8   : > { %313 = vst.msk [vmem:[#allocation2 + $0x8] sm:$0xff] %vm311_vm1, %v304_v60  ;;  %v292_v63 = vpop.xlane.xlu1 %291 }
  0xd9   : > { %v308_v0 = vadd.f32 %v292_v63, %v260_v61  ;;  %v287_v1 = vpop.xlane.xlu0 %286 }
  0xda   : > { %v307_v2 = vadd.f32 %v287_v1, %v259_v62 }
  0xdb   : > { %317 = vst.msk [vmem:[#allocation2 + $0x28] sm:$0xff] %vm311_vm1, %v308_v0 }
  0xdc   : > { %316 = vst.msk [vmem:[#allocation2 + $0x20] sm:$0xff] %vm311_vm1, %v307_v2  ;;  %v302_v6 = vpop.xlane.xlu1 %301 }
  0xdd   : > { %v310_v8 = vadd.f32 %v302_v6, %v262_v4  ;;  %v297_v9 = vpop.xlane.xlu0 %296 }
  0xde   : > { %v309_v10 = vadd.f32 %v297_v9, %v261_v5 }
  0xdf   : > { %319 = vst.msk [vmem:[#allocation2 + $0x38] sm:$0xff] %vm311_vm1, %v310_v8 }
  0xe0   : > { %318 = vst.msk [vmem:[#allocation2 + $0x30] sm:$0xff] %vm311_vm1, %v309_v10  ;;  %v369_v15 = vpop.xlane.xlu1 %368 }
  0xe1   : > { %v401_v16 = vadd.f32 %v369_v15, %v321_v11  ;;  %v364_v17 = vpop.xlane.xlu0 %363 }
  0xe2   : > { %v400_v18 = vadd.f32 %v364_v17, %v320_v13 }
  0xe3   : > { %409 = vst.msk [vmem:[#allocation3 + $0x8] sm:$0xff] %vm311_vm1, %v401_v16 }
  0xe4   : > { %408 = vst.msk [vmem:[#allocation3] sm:$0xff] %vm311_vm1, %v400_v18  ;;  %v379_v21 = vpop.xlane.xlu1 %378 }
  0xe5   : > { %v403_v3 = vadd.f32 %v379_v21, %v323_v19  ;;  %v374_v12 = vpop.xlane.xlu0 %373 }
  0xe6   : > { %v402_v22 = vadd.f32 %v374_v12, %v322_v20 }
  0xe7   : > { %411 = vst.msk [vmem:[#allocation3 + $0x18] sm:$0xff] %vm311_vm1, %v403_v3 }
  0xe8   : > { %410 = vst.msk [vmem:[#allocation3 + $0x10] sm:$0xff] %vm311_vm1, %v402_v22  ;;  %v389_v27 = vpop.xlane.xlu1 %388 }
  0xe9   : > { %v405_v28 = vadd.f32 %v389_v27, %v325_v24  ;;  %v384_v29 = vpop.xlane.xlu0 %383 }
  0xea   : > { %v404_v25 = vadd.f32 %v384_v29, %v324_v14 }
  0xeb   : > { %413 = vst.msk [vmem:[#allocation3 + $0x28] sm:$0xff] %vm311_vm1, %v405_v28 }
  0xec   : > { %412 = vst.msk [vmem:[#allocation3 + $0x20] sm:$0xff] %vm311_vm1, %v404_v25  ;;  %v399_v32 = vpop.xlane.xlu1 %398  ;;  %419 = sbr.rel (%p639_p8) target bundleno = 308 (0x134), region = 44 }
  0xed   : > { %v407_v33 = vadd.f32 %v399_v32, %v327_v26  ;;  %v394_v34 = vpop.xlane.xlu0 %393 }
  0xee   : > { %v406_v7 = vadd.f32 %v394_v34, %v326_v30 }
  0xef   : > { %415 = vst.msk [vmem:[#allocation3 + $0x38] sm:$0xff] %vm311_vm1, %v407_v33 }
  0xf0   : > { %414 = vst.msk [vmem:[#allocation3 + $0x30] sm:$0xff] %vm311_vm1, %v406_v7 }
  0xf1   : > { %v420_v35 = vld [vmem:[#allocation2] sm:$0xff]  ;;  %v421_v42 = vld [vmem:[#allocation2 + $0x8] sm:$0xff]  ;;  %v422_v51 = vld [vmem:[#allocation2 + $0x10] sm:$0xff] }
  0xf2   : > { %v424_v36 = vld [vmem:[#allocation2 + $0x20] sm:$0xff]  ;;  %v973_v37 = vmul.f32 0.0009765625, %v420_v35  ;;  %v425_v41 = vld [vmem:[#allocation2 + $0x28] sm:$0xff]  ;;  %v977_v44 = vmul.f32 0.0009765625, %v421_v42  ;;  %v426_v50 = vld [vmem:[#allocation2 + $0x30] sm:$0xff]  ;;  %v987_v54 = vmul.f32 0.0009765625, %v422_v51 }
  0xf3   : > { %v436_v23 = vld [vmem:[#allocation3] sm:$0xff]  ;;  %v975_v38 = vmul.f32 0.0009765625, %v424_v36  ;;  %v437_v45 = vld [vmem:[#allocation3 + $0x8] sm:$0xff]  ;;  %v983_v49 = vmul.f32 0.0009765625, %v425_v41  ;;  %v989_v55 = vmul.f32 0.0009765625, %v426_v50  ;;  %v438_v56 = vld [vmem:[#allocation3 + $0x10] sm:$0xff] }
  0xf4   : > { %v440_v31 = vld [vmem:[#allocation3 + $0x20] sm:$0xff]  ;;  %v444_v40 = vmul.f32 0.0009765625, %v436_v23  ;;  %v441_v46 = vld [vmem:[#allocation3 + $0x28] sm:$0xff]  ;;  %v452_v48 = vmul.f32 %v973_v37, %v973_v37  ;;  %v445_v47 = vmul.f32 0.0009765625, %v437_v45  ;;  %v453_v53 = vmul.f32 %v977_v44, %v977_v44  ;;  %v423_v62 = vld [vmem:[#allocation2 + $0x18] sm:$0xff] }
  0xf5   : > { %v448_v43 = vmul.f32 0.0009765625, %v440_v31  ;;  %v456_v39 = vmul.f32 %v975_v38, %v975_v38  ;;  %v449_v52 = vmul.f32 0.0009765625, %v441_v46  ;;  %v457_v60 = vmul.f32 %v983_v49, %v983_v49  ;;  %v427_v63 = vld [vmem:[#allocation2 + $0x38] sm:$0xff] }
  0xf6   : > { %v460_v58 = vsub.f32 %v444_v40, %v452_v48  ;;  %v446_v61 = vmul.f32 0.0009765625, %v438_v56  ;;  %v461_v0 = vsub.f32 %v445_v47, %v453_v53  ;;  %v454_v2 = vmul.f32 %v987_v54, %v987_v54  ;;  %v439_v5 = vld [vmem:[#allocation3 + $0x18] sm:$0xff] }
  0xf7   : > { %v442_v57 = vld [vmem:[#allocation3 + $0x30] sm:$0xff]  ;;  %v464_v59 = vsub.f32 %v448_v43, %v456_v39  ;;  %v458_v4 = vmul.f32 %v989_v55, %v989_v55  ;;  %v465_v9 = vsub.f32 %v449_v52, %v457_v60  ;;  %v997_v10 = vmul.f32 0.0009765625, %v423_v62  ;;  %v443_v11 = vld [vmem:[#allocation3 + $0x38] sm:$0xff] }
  0xf8   : > { %v450_v1 = vmul.f32 0.0009765625, %v442_v57  ;;  %v468_v6 = vmax.f32 %v460_v58, 0.0  ;;  %v469_v13 = vmax.f32 %v461_v0, 0.0  ;;  %v462_v15 = vsub.f32 %v446_v61, %v454_v2 }
  0xf9   : > { %v472_v8 = vmax.f32 %v464_v59, 0.0  ;;  %v999_v17 = vmul.f32 0.0009765625, %v427_v63  ;;  %v473_v20 = vmax.f32 %v465_v9, 0.0  ;;  %v447_v21 = vmul.f32 0.0009765625, %v439_v5 }
  0xfa   : > { %v466_v16 = vsub.f32 %v450_v1, %v458_v4  ;;  %v476_v18 = vadd.f32 0.001, %v468_v6  ;;  %v477_v3 = vadd.f32 0.001, %v469_v13  ;;  %v470_v12 = vmax.f32 %v462_v15, 0.0 }
  0xfb   : > { %v480_v19 = vadd.f32 0.001, %v472_v8  ;;  %v451_v24 = vmul.f32 0.0009765625, %v443_v11  ;;  %v481_v14 = vadd.f32 0.001, %v473_v20  ;;  %v455_v27 = vmul.f32 %v997_v10, %v997_v10 }
  0xfc   : > { %v474_v22 = vmax.f32 %v466_v16, 0.0  ;;  %686 = vrsqrt.f32 %v476_v18  ;;  %v459_v28 = vmul.f32 %v999_v17, %v999_v17  ;;  %v478_v29 = vadd.f32 0.001, %v470_v12 }
  0xfd   : > { %688 = vrsqrt.f32 %v480_v19  ;;  %v463_v26 = vsub.f32 %v447_v21, %v455_v27  ;;  %v526_v27 = vld [vmem:[%s1133_s1 + $0x8] sm:$0xff] }
  0xfe   : > { %v482_v25 = vadd.f32 0.001, %v474_v22  ;;  %690 = vrsqrt.f32 %v477_v3  ;;  %v467_v30 = vsub.f32 %v451_v24, %v459_v28  ;;  %v525_v24 = vld [vmem:[%s1133_s1] sm:$0xff] }
  0xff   : > { %692 = vrsqrt.f32 %v481_v14  ;;  %v471_v32 = vmax.f32 %v463_v26, 0.0 }
 0x100   : > { %694 = vrsqrt.f32 %v478_v29  ;;  %v475_v33 = vmax.f32 %v467_v30, 0.0 }
 0x101   : > { %696 = vrsqrt.f32 %v482_v25  ;;  %v479_v34 = vadd.f32 0.001, %v471_v32  ;;  %v527_v25 = vld [vmem:[%s1133_s1 + $0x10] sm:$0xff] }
 0x102   : > { %v483_v7 = vadd.f32 0.001, %v475_v33 }
 0x103   : > { %698 = vrsqrt.f32 %v479_v34  ;;  %v557_v34 = vld [vmem:[%s1134_s2] sm:$0xff] }
 0x104   : > { %700 = vrsqrt.f32 %v483_v7 }
 0x109   : > { %v687_v35 = vpop.eup %686 }
 0x10a   : > { %v689_v36 = vpop.eup %688  ;;  %v492_v23 = vmul.f32 %v687_v35, %v468_v6 }
 0x10b   : > { %v691_v31 = vpop.eup %690  ;;  %v496_v40 = vmul.f32 %v689_v36, %v472_v8 }
 0x10c   : > { %v693_v42 = vpop.eup %692  ;;  %v500_v43 = vmul.f32 %v687_v35, %v492_v23  ;;  %v493_v41 = vmul.f32 %v691_v31, %v469_v13 }
 0x10d   : > { %v695_v45 = vpop.eup %694  ;;  %v504_v46 = vmul.f32 %v689_v36, %v496_v40  ;;  %v497_v48 = vmul.f32 %v693_v42, %v473_v20  ;;  %v528_v40 = vld [vmem:[%s1133_s1 + $0x18] sm:$0xff] }
 0x10e   : > { %v697_v39 = vpop.eup %696  ;;  %v508_v47 = vsel %vm311_vm1, %v500_v43, 0.0  ;;  %v501_v51 = vmul.f32 %v691_v31, %v493_v41  ;;  %v494_v50 = vmul.f32 %v695_v45, %v470_v12  ;;  %v558_v43 = vld [vmem:[%s1134_s2 + $0x8] sm:$0xff] }
 0x10f   : > { %v509_v52 = vsel %vm311_vm1, %v504_v46, 0.0  ;;  %v505_v53 = vmul.f32 %v693_v42, %v497_v48  ;;  %v498_v56 = vmul.f32 %v697_v39, %v474_v22 }
 0x110   : > { %v510_v57 = vadd.f32 %v509_v52, %v508_v47  ;;  %v511_v58 = vsel %vm311_vm1, %v501_v51, 0.0  ;;  %v502_v59 = vmul.f32 %v695_v45, %v494_v50  ;;  %v1008_v60 = vpop.eup %698 }
 0x111   : > { %v512_v61 = vsel %vm311_vm1, %v505_v53, 0.0  ;;  %v506_v62 = vmul.f32 %v697_v39, %v498_v56  ;;  %v1011_v63 = vpop.eup %700  ;;  %v495_v4 = vmul.f32 %v1008_v60, %v471_v32 }
 0x112   : > { %v521_v0 = vmul.f32 0.5, %v510_v57  ;;  %v513_v1 = vadd.f32 %v512_v61, %v511_v58  ;;  %v514_v2 = vsel %vm311_vm1, %v502_v59, 0.0  ;;  %v499_v6 = vmul.f32 %v1011_v63, %v475_v33 }
 0x113   : > { %v515_v5 = vsel %vm311_vm1, %v506_v62, 0.0  ;;  %v503_v13 = vmul.f32 %v1008_v60, %v495_v4 }
 0x114   : > { %v529_v8 = vadd.f32 1e-05, %v521_v0  ;;  %v522_v9 = vmul.f32 0.5, %v513_v1  ;;  %v516_v11 = vadd.f32 %v515_v5, %v514_v2  ;;  %v507_v15 = vmul.f32 %v1011_v63, %v499_v6 }
 0x115   : > { %v517_v19 = vsel %vm311_vm1, %v503_v13, 0.0 }
 0x116   : > { %702 = vrsqrt.f32 %v529_v8  ;;  %v530_v16 = vadd.f32 1e-05, %v522_v9  ;;  %v523_v18 = vmul.f32 0.5, %v516_v11  ;;  %v518_v20 = vsel %vm311_vm1, %v507_v15, 0.0 }
 0x117   : > { %v519_v3 = vadd.f32 %v518_v20, %v517_v19 }
 0x118   : > { %704 = vrsqrt.f32 %v530_v16  ;;  %v531_v21 = vadd.f32 1e-05, %v523_v18 }
 0x119   : > { %v524_v12 = vmul.f32 0.5, %v519_v3 }
 0x11a   : > { %706 = vrsqrt.f32 %v531_v21 }
 0x11b   : > { %v532_v22 = vadd.f32 1e-05, %v524_v12 }
 0x11d   : > { %708 = vrsqrt.f32 %v532_v22 }
 0x123   : > { %v703_v14 = vpop.eup %702 }
 0x124   : > { %v537_v28 = vmul.f32 %v703_v14, %v525_v24 }
 0x125   : > { %v705_v29 = vpop.eup %704 }
 0x126   : > { %v541_v26 = vmul.f32 %v687_v35, %v537_v28  ;;  %v538_v30 = vmul.f32 %v705_v29, %v526_v27  ;;  %v545_v32 = vmul.f32 %v689_v36, %v537_v28 }
 0x127   : > { %v707_v33 = vpop.eup %706 }
 0x128   : > { %549 = vst.msk [vmem:[%s1135_s3] sm:$0xff] %vm311_vm1, %v541_v26  ;;  %v542_v7 = vmul.f32 %v691_v31, %v538_v30  ;;  %v539_v23 = vmul.f32 %v707_v33, %v527_v25  ;;  %553 = vst.msk [vmem:[%s1135_s3 + $0x20] sm:$0xff] %vm311_vm1, %v545_v32  ;;  %v546_v35 = vmul.f32 %v693_v42, %v538_v30 }
 0x129   : > { %v561_v36 = vmul.f32 %v541_v26, %v973_v37  ;;  %v565_v41 = vmul.f32 %v545_v32, %v975_v38  ;;  %v559_v38 = vld [vmem:[%s1134_s2 + $0x10] sm:$0xff] }
 0x12a   : > { %550 = vst.msk [vmem:[%s1135_s3 + $0x8] sm:$0xff] %vm311_vm1, %v542_v7  ;;  %v543_v31 = vmul.f32 %v695_v45, %v539_v23  ;;  %554 = vst.msk [vmem:[%s1135_s3 + $0x28] sm:$0xff] %vm311_vm1, %v546_v35  ;;  %v547_v37 = vmul.f32 %v697_v39, %v539_v23  ;;  %v562_v46 = vmul.f32 %v542_v7, %v977_v44  ;;  %v709_v48 = vpop.eup %708 }
 0x12b   : > { %v569_v42 = vsub.f32 %v557_v34, %v561_v36  ;;  %v573_v47 = vsub.f32 %v557_v34, %v565_v41  ;;  %v566_v51 = vmul.f32 %v546_v35, %v983_v49  ;;  %v540_v45 = vmul.f32 %v709_v48, %v528_v40 }
 0x12c   : > { %551 = vst.msk [vmem:[%s1135_s3 + $0x10] sm:$0xff] %vm311_vm1, %v543_v31  ;;  %555 = vst.msk [vmem:[%s1135_s3 + $0x30] sm:$0xff] %vm311_vm1, %v547_v37  ;;  %v570_v44 = vsub.f32 %v558_v43, %v562_v46  ;;  %v563_v39 = vmul.f32 %v543_v31, %v987_v54  ;;  %v567_v49 = vmul.f32 %v547_v37, %v989_v55  ;;  %v560_v54 = vld [vmem:[%s1134_s2 + $0x18] sm:$0xff] }
 0x12d   : > { %577 = vst.msk [vmem:[%s1136_s4] sm:$0xff] %vm311_vm1, %v569_v42  ;;  %581 = vst.msk [vmem:[%s1136_s4 + $0x20] sm:$0xff] %vm311_vm1, %v573_v47  ;;  %v574_v50 = vsub.f32 %v558_v43, %v566_v51  ;;  %v544_v52 = vmul.f32 %v1008_v60, %v540_v45  ;;  %v548_v53 = vmul.f32 %v1011_v63, %v540_v45 }
 0x12e   : > { %578 = vst.msk [vmem:[%s1136_s4 + $0x8] sm:$0xff] %vm311_vm1, %v570_v44  ;;  %v571_v56 = vsub.f32 %v559_v38, %v563_v39  ;;  %v575_v57 = vsub.f32 %v559_v38, %v567_v49 }
 0x12f   : > { %582 = vst.msk [vmem:[%s1136_s4 + $0x28] sm:$0xff] %vm311_vm1, %v574_v50  ;;  %552 = vst.msk [vmem:[%s1135_s3 + $0x18] sm:$0xff] %vm311_vm1, %v544_v52  ;;  %v564_v55 = vmul.f32 %v544_v52, %v997_v10  ;;  %v568_v58 = vmul.f32 %v548_v53, %v999_v17 }
 0x130   : > { %556 = vst.msk [vmem:[%s1135_s3 + $0x38] sm:$0xff] %vm311_vm1, %v548_v53  ;;  %579 = vst.msk [vmem:[%s1136_s4 + $0x10] sm:$0xff] %vm311_vm1, %v571_v56 }
 0x131   : > { %583 = vst.msk [vmem:[%s1136_s4 + $0x30] sm:$0xff] %vm311_vm1, %v575_v57  ;;  %v572_v59 = vsub.f32 %v560_v54, %v564_v55  ;;  %v576_v60 = vsub.f32 %v560_v54, %v568_v58 }
 0x133   : > { %580 = vst.msk [vmem:[%s1136_s4 + $0x18] sm:$0xff] %vm311_vm1, %v572_v59  ;;  %584 = vst.msk [vmem:[%s1136_s4 + $0x38] sm:$0xff] %vm311_vm1, %v576_v60 }
 0x134 PF: > { %p15_p1 = scmp.ge.s32.totalorder %s826_s20, 4   ;;  %s1141_s15 = smov %s764_s16 }
 0x135   : > { %s1142_s16 = smov %s768_s17  ;;  %s1143_s17 = smov %s836_s23 }
 0x136   : > { %s1144_s18 = smov %s826_s20  ;;  %17 = sbr.rel (!%p15_p1) target bundleno = 3 (0x3), region = 84 }
 0x13b   :  { %602 = vsyncpa [#allocation5], 1 }
 0x13c   :  { %604 = vsyncpa [#allocation5 + $0x1], 1 }

</bundles_post_ra>
